<compile_context>
chip_gen: v7x
topology: tpu7x:2x2x1
jax: 0.10.0
libtpu: 0.0.40
codegen_flags: <defaults>
</compile_context>

<pallas_src>
import jax
import jax.numpy as jnp
from jax.experimental import pallas as pl
from jax.experimental.pallas import tpu as pltpu


def basic_nn_kernel(params_ref, x_ref, o_ref):
    # params (SMEM scalars): [w00, b00, w01, w10, b10, w11, final_bias]
    w00 = params_ref[0]
    b00 = params_ref[1]
    w01 = params_ref[2]
    w10 = params_ref[3]
    b10 = params_ref[4]
    w11 = params_ref[5]
    final_bias = params_ref[6]

    x = x_ref[...]

    top = jnp.maximum(x * w00 + b00, 0.0) * w01
    bot = jnp.maximum(x * w10 + b10, 0.0) * w11
    o_ref[...] = jnp.maximum(top + bot + final_bias, 0.0).astype(o_ref.dtype)


def _select_tile_r(rows, sublane, row_bytes, target_block_bytes,
                   min_block_bytes, min_steps):
    """Pick a sublane-aligned row-tile height for the (rows, W) slab."""
    total_bytes = rows * row_bytes
    # Small arrays: single full-extent block (one DMA in/out, no pipeline bubbles).
    if total_bytes <= min_block_bytes or rows <= sublane:
        return rows
    # Byte-budget cap (~2 MiB target keeps 2 bufs x (in+out) well under the
    # 32 MiB scoped VMEM limit and v7x's 64 MiB physical VMEM).
    cap_bytes = max(target_block_bytes // row_bytes, 1)
    # Step-count cap: at least `min_steps` grid steps so v7x's two TensorCores
    # both get fed and the pipeline isn't all prologue/epilogue...
    cap_steps = pl.cdiv(rows, min_steps)
    # ...but never shrink a block below ~min_block_bytes (per-step overhead).
    floor_rows = max(min_block_bytes // row_bytes, sublane)
    cap = max(min(cap_bytes, cap_steps), floor_rows)
    cap = max((cap // sublane) * sublane, sublane)
    if cap >= rows:
        return rows
    # Prefer a tile_r that divides rows evenly (unmasked last step, balanced
    # two-core split); search down to ~cap/2 before accepting a ragged tail.
    cand = cap
    while cand >= sublane and cand * 2 >= cap:
        if rows % cand == 0:
            return cand
        cand -= sublane
    return cap


def basic_nn(x, params, *, lane_width=512,
             target_block_bytes=2 * 1024 * 1024,
             min_block_bytes=1 * 1024 * 1024,
             min_steps=8,
             donate_x=False):
    """Apply BasicNN elementwise to an array x of any shape."""
    assert lane_width % 128 == 0
    orig_shape = x.shape
    itemsize = jnp.dtype(x.dtype).itemsize
    # Sublane multiple for the second-to-last dim: 8 f32, 16 bf16, 32 int8.
    # (Guarded so 8-byte dtypes can't produce 0.)
    sublane = max((8 * 4) // itemsize, 8)

    # Lane-dense slab view: flatten (metadata-only for a contiguous array) and
    # reshape to (rows, W). Only a ragged tail forces an actual pad copy.
    n = x.size
    flat = x.reshape(-1)
    pad = (-n) % lane_width
    if pad:
        flat = jnp.pad(flat, (0, pad))
    rows = flat.size // lane_width
    x2 = flat.reshape(rows, lane_width)

    row_bytes = lane_width * itemsize
    tile_r = _select_tile_r(rows, sublane, row_bytes, target_block_bytes,
                            min_block_bytes, min_steps)
    grid = (pl.cdiv(rows, tile_r),)

    io_aliases = {1: 0} if donate_x else {}

    out2 = pl.pallas_call(
        basic_nn_kernel,
        out_shape=jax.ShapeDtypeStruct((rows, lane_width), x.dtype),
        grid=grid,
        in_specs=[
            pl.BlockSpec(memory_space=pltpu.MemorySpace.SMEM),  # params, untiled
            pl.BlockSpec((tile_r, lane_width), lambda i: (i, 0)),
        ],
        out_specs=pl.BlockSpec((tile_r, lane_width), lambda i: (i, 0)),
        compiler_params=pltpu.CompilerParams(
            dimension_semantics=("parallel",),   # lets v7x shard steps across 2 TCs
            vmem_limit_bytes=32 * 1024 * 1024,   # raise v5e's 16 MiB scoped default
        ),
        input_output_aliases=io_aliases,
    )(params, x2)

    out = out2.reshape(-1)
    if pad:
        out = out[:n]
    return out.reshape(orig_shape)


def basic_nn_ref(x, params):
    w00, b00, w01, w10, b10, w11, final_bias = [params[i] for i in range(7)]
    top = jnp.maximum(x * w00 + b00, 0.0) * w01
    bot = jnp.maximum(x * w10 + b10, 0.0) * w11
    return jnp.maximum(top + bot + final_bias, 0.0)


if __name__ == "__main__":
    # Deterministic parameters matching BasicNN.__init__
    params = jnp.array([1.7, 0.8, 0.8, 0.8, 0.8, 0.8, 0.8], dtype=jnp.float32)

    key = jax.random.PRNGKey(0)
    x = jax.random.normal(key, (16, 256), dtype=jnp.float32)

    out = jax.block_until_ready(basic_nn(x, params))
    ref = basic_nn_ref(x, params)
    assert out.shape == x.shape and out.dtype == x.dtype
    assert jnp.allclose(out, ref, atol=1e-6, rtol=1e-6)

    # Ragged / narrow last dim: exercises the lane-dense reshape + tail-pad path.
    x_ragged = jax.random.normal(jax.random.PRNGKey(1), (37, 100), dtype=jnp.float32)
    out_ragged = jax.block_until_ready(basic_nn(x_ragged, params))
    assert out_ragged.shape == x_ragged.shape
    assert jnp.allclose(out_ragged, basic_nn_ref(x_ragged, params), atol=1e-6, rtol=1e-6)

    # Larger shape exercising the multi-step 1-D grid path (row-blocked slabs).
    x_big = jax.random.normal(jax.random.PRNGKey(2), (2048, 1024), dtype=jnp.float32)
    out_big = jax.block_until_ready(basic_nn(x_big, params))
    assert jnp.allclose(out_big, basic_nn_ref(x_big, params), atol=1e-6, rtol=1e-6)

    print("KERNEL_OK")
</pallas_src>

<mosaic_0001>
module attributes {stable_mosaic.version = 11 : i64} {
  func.func @basic_nn_kernel(%arg0: i32, %arg1: memref<7xf32, #tpu.memory_space<smem>>, %arg2: memref<8x512xf32, #tpu.memory_space<vmem>>, %arg3: memref<8x512xf32, #tpu.memory_space<vmem>>) attributes {dimension_semantics = [#tpu.dimension_semantics<parallel>], iteration_bounds = array<i64: 1>, scalar_prefetch = 0 : i64, scratch_operands = 0 : i64, tpu.core_type = #tpu.core_type<tc>, window_params = [{transform_indices = @transform_0, window_bounds = array<i64: 7>}, {transform_indices = @transform_1, window_bounds = array<i64: 8, 512>}, {transform_indices = @transform_2, window_bounds = array<i64: 8, 512>}]} {
    %c0 = arith.constant 0 : index
    %0 = memref.load %arg1[%c0] : memref<7xf32, #tpu.memory_space<smem>>
    %c1 = arith.constant 1 : index
    %1 = memref.load %arg1[%c1] : memref<7xf32, #tpu.memory_space<smem>>
    %c2 = arith.constant 2 : index
    %2 = memref.load %arg1[%c2] : memref<7xf32, #tpu.memory_space<smem>>
    %c3 = arith.constant 3 : index
    %3 = memref.load %arg1[%c3] : memref<7xf32, #tpu.memory_space<smem>>
    %c4 = arith.constant 4 : index
    %4 = memref.load %arg1[%c4] : memref<7xf32, #tpu.memory_space<smem>>
    %c5 = arith.constant 5 : index
    %5 = memref.load %arg1[%c5] : memref<7xf32, #tpu.memory_space<smem>>
    %c6 = arith.constant 6 : index
    %6 = memref.load %arg1[%c6] : memref<7xf32, #tpu.memory_space<smem>>
    %c0_0 = arith.constant 0 : index
    %c0_1 = arith.constant 0 : index
    %7 = vector.load %arg2[%c0_0, %c0_1] : memref<8x512xf32, #tpu.memory_space<vmem>>, vector<8x512xf32>
    %8 = vector.broadcast %0 : f32 to vector<8x512xf32>
    %9 = arith.mulf %7, %8 : vector<8x512xf32>
    %10 = vector.broadcast %1 : f32 to vector<8x512xf32>
    %11 = arith.addf %9, %10 : vector<8x512xf32>
    %cst = arith.constant 0.000000e+00 : f32
    %12 = vector.broadcast %cst : f32 to vector<8x512xf32>
    %13 = arith.maximumf %11, %12 : vector<8x512xf32>
    %14 = vector.broadcast %2 : f32 to vector<8x512xf32>
    %15 = arith.mulf %13, %14 : vector<8x512xf32>
    %16 = vector.broadcast %3 : f32 to vector<8x512xf32>
    %17 = arith.mulf %7, %16 : vector<8x512xf32>
    %18 = vector.broadcast %4 : f32 to vector<8x512xf32>
    %19 = arith.addf %17, %18 : vector<8x512xf32>
    %cst_2 = arith.constant 0.000000e+00 : f32
    %20 = vector.broadcast %cst_2 : f32 to vector<8x512xf32>
    %21 = arith.maximumf %19, %20 : vector<8x512xf32>
    %22 = vector.broadcast %5 : f32 to vector<8x512xf32>
    %23 = arith.mulf %21, %22 : vector<8x512xf32>
    %24 = arith.addf %15, %23 : vector<8x512xf32>
    %25 = vector.broadcast %6 : f32 to vector<8x512xf32>
    %26 = arith.addf %24, %25 : vector<8x512xf32>
    %cst_3 = arith.constant 0.000000e+00 : f32
    %27 = vector.broadcast %cst_3 : f32 to vector<8x512xf32>
    %28 = arith.maximumf %26, %27 : vector<8x512xf32>
    %c0_4 = arith.constant 0 : index
    %c0_5 = arith.constant 0 : index
    %29 = vector.load %arg3[%c0_4, %c0_5] : memref<8x512xf32, #tpu.memory_space<vmem>>, vector<8x512xf32>
    tpu.vector_store %arg3[%c0_4, %c0_5], %28 {strides = array<i32>} : memref<8x512xf32, #tpu.memory_space<vmem>>, vector<8x512xf32>,
    return
  }
  func.func @transform_0(%arg0: i32) -> i32 {
    %c0_i32 = arith.constant 0 : i32
    %c0_i32_0 = arith.constant 0 : i32
    return %c0_i32 : i32
  }
  func.func @transform_1(%arg0: i32) -> (i32, i32) {
    %c0_i32 = arith.constant 0 : i32
    %c0_i32_0 = arith.constant 0 : i32
    return %arg0, %c0_i32 : i32, i32
  }
  func.func @transform_2(%arg0: i32) -> (i32, i32) {
    %c0_i32 = arith.constant 0 : i32
    %c0_i32_0 = arith.constant 0 : i32
    return %arg0, %c0_i32 : i32, i32
  }
}

</mosaic_0001>

<bundles_post_ra>
// kernel: tpu_custom_call.1
= control target key start
LH: loop header
LB: loop body
LE: loop exit
PB: predicated region body
PF: predicated region fallthrough
CT: control target
= control target key end

     0   :  { %7 = vsyncpa [#allocation5], 0  ;;  %s243_s0 = inlined_call_operand.hbm [shape: f32[7], index: 0, kind: input, shape index: {}]   ;;  %s244_s1 = inlined_call_operand.hbm [shape: f32[8,512], index: 1, kind: input, shape index: {}]   ;;  %s245_s2 = inlined_call_operand.hbm [shape: f32[8,512], index: 2, kind: output, shape index: {}]  }
   0x1   :  { %8 = vsyncpa [#allocation3], 0 }
   0x2   :  { %9 = vsyncpa [#allocation4], 0  ;;  %s126_s11 = scalar_lea.hbm %s243_s0, 16 }
   0x3   :  { %p127_p0 = scmp.ne.s32.totalorder %s243_s0, %s126_s11  ;;  %p130_p1 = scmp.lt.u32.totalorder %s126_s11, %s243_s0 }
   0x5   :  { %p132_p2 = pnand %p130_p1, %p127_p0 }
   0x7   :  { %135 = shalt.err (!%p132_p2)
}
   0x8   :  { %s186_s16 = smov [#allocation2]   ;;  %s187_s19 = smov [#allocation6]  }
   0x9   :  { %17 = dma.hbm_to_smem %s243_s0, 16, %s186_s16, [#allocation5]  }
   0xa   :  { %s24_s20 = sshll.u32 %s187_s19, 4  ;;  %s136_s23 = scalar_lea.hbm %s244_s1, 512  ;;  %s25_s20 = int_to_ptr.vmem [resolvable:$true] %s24_s20 }
   0xb   :  { %p137_p3 = scmp.ne.s32.totalorder %s244_s1, %s136_s23  ;;  %p140_p4 = scmp.lt.u32.totalorder %s136_s23, %s244_s1 }
   0xd   :  { %p142_p5 = pnand %p140_p4, %p137_p3 }
   0xf   :  { %145 = shalt.err (!%p142_p5)
}
  0x10   :  { %s146_s28 = scalar_lea.vmem %s25_s20, 512  ;;  %p151_p7 = scmp.lt.s32.totalorder %s25_s20, %s25_s20 }
  0x11   :  { %p147_p6 = scmp.ne.s32.totalorder %s25_s20, %s146_s28  ;;  %p152_p8 = scmp.lt.s32.totalorder %s146_s28, %s146_s28 }
  0x13   :  { %p153_p9 = por %p152_p8, %p151_p7 }
  0x15   :  { %p154_p10 = pnand %p153_p9, %p147_p6 }
  0x17   :  { %157 = shalt.err (!%p154_p10)
}
  0x18   :  { %27 = dma.hbm_to_vmem [thread:$0]  %s244_s1, 512, %s25_s20, [#allocation3]  }
  0x19   :  { %180 = dma.done.wait [#allocation5], 16  }
  0x1a   :  { %181 = vsyncadd [#allocation5], 4294967280 }
  0x1b   :  { %182 = dma.done.wait [#allocation3], 512  }
  0x1c   :  { %183 = vsyncadd [#allocation3], 4294966784 }
  0x1d   :  { %34 = sfence }
  0x1e   :  { %s35_s30 = sld [smem:[#allocation2]]  ;;  %s117_s3 = sld [smem:[#allocation2 + $0x1]]  ;;  %v42_v0 = vld [vmem:[#allocation6] sm:$0xff]  ;;  %v43_v1 = vld [vmem:[#allocation6 + $0x8] sm:$0xff]  ;;  %v44_v4 = vld [vmem:[#allocation6 + $0x10] sm:$0xff] }
  0x1f   :  { %s118_s4 = sld [smem:[#allocation2 + $0x2]]  ;;  %s119_s5 = sld [smem:[#allocation2 + $0x3]]  ;;  %v45_v8 = vld [vmem:[#allocation6 + $0x18] sm:$0xff] }
  0x20   :  { %s120_s6 = sld [smem:[#allocation2 + $0x4]]  ;;  %s121_s7 = sld [smem:[#allocation2 + $0x5]] }
  0x21   :  { %s228_s8 = sld [smem:[#allocation2 + $0x6]]  ;;  %s188_s1 = smov [#allocation7]  }
  0x22   :  { %s107_s9 = sshll.u32 %s188_s1, 4  ;;  %s108_s9 = int_to_ptr.vmem [resolvable:$true] %s107_s9 }
  0x23   :  { %s158_s10 = scalar_lea.vmem %s108_s9, 512  ;;  %p163_p12 = scmp.lt.s32.totalorder %s108_s9, %s108_s9 }
  0x24   :  { %v46_v2 = vstv %s35_s30  ;;  %v51_v3 = vstv %s117_s3  ;;  %p159_p11 = scmp.ne.s32.totalorder %s108_s9, %s158_s10  ;;  %p164_p13 = scmp.lt.s32.totalorder %s158_s10, %s158_s10 }
  0x25   :  { %v47_v5 = vmul.f32 %v46_v2, %v42_v0  ;;  %v65_v6 = vstv %s119_s5  ;;  %v48_v7 = vmul.f32 %v46_v2, %v43_v1  ;;  %v60_v9 = vstv %s118_s4 }
  0x26   :  { %v66_v10 = vmul.f32 %v65_v6, %v42_v0  ;;  %v70_v11 = vstv %s120_s6  ;;  %v67_v12 = vmul.f32 %v65_v6, %v43_v1  ;;  %v79_v14 = vstv %s121_s7  ;;  %p165_p0 = por %p164_p13, %p163_p12 }
  0x27   :  { %v52_v13 = vadd.f32 %v51_v3, %v47_v5  ;;  %v53_v15 = vadd.f32 %v51_v3, %v48_v7  ;;  %v49_v16 = vmul.f32 %v46_v2, %v44_v4  ;;  %v68_v19 = vmul.f32 %v65_v6, %v44_v4 }
  0x28   :  { %v71_v17 = vadd.f32 %v70_v11, %v66_v10  ;;  %v72_v18 = vadd.f32 %v70_v11, %v67_v12  ;;  %v50_v20 = vmul.f32 %v46_v2, %v45_v8  ;;  %v69_v24 = vmul.f32 %v65_v6, %v45_v8  ;;  %p166_p1 = pnand %p165_p0, %p159_p11 }
  0x29   :  { %v56_v21 = vmax.f32 %v52_v13, 0.0  ;;  %v57_v22 = vmax.f32 %v53_v15, 0.0  ;;  %v54_v23 = vadd.f32 %v51_v3, %v49_v16  ;;  %v73_v27 = vadd.f32 %v70_v11, %v68_v19 }
  0x2a   :  { %v75_v25 = vmax.f32 %v71_v17, 0.0  ;;  %v76_v26 = vmax.f32 %v72_v18, 0.0  ;;  %v55_v28 = vadd.f32 %v51_v3, %v50_v20  ;;  %v74_v32 = vadd.f32 %v70_v11, %v69_v24 }
  0x2b   :  { %v61_v29 = vmul.f32 %v60_v9, %v56_v21  ;;  %v62_v30 = vmul.f32 %v60_v9, %v57_v22  ;;  %v58_v31 = vmax.f32 %v54_v23, 0.0  ;;  %v77_v35 = vmax.f32 %v73_v27, 0.0 }
  0x2c   :  { %v80_v33 = vmul.f32 %v79_v14, %v75_v25  ;;  %v81_v34 = vmul.f32 %v79_v14, %v76_v26  ;;  %v59_v36 = vmax.f32 %v55_v28, 0.0  ;;  %v88_v37 = vstv %s228_s8 }
  0x2d   :  { %v63_v38 = vmul.f32 %v60_v9, %v58_v31  ;;  %v78_v39 = vmax.f32 %v74_v32, 0.0  ;;  %v82_v42 = vmul.f32 %v79_v14, %v77_v35 }
  0x2e   :  { %v84_v40 = vadd.f32 %v80_v33, %v61_v29  ;;  %v85_v41 = vadd.f32 %v81_v34, %v62_v30  ;;  %v64_v43 = vmul.f32 %v60_v9, %v59_v36 }
  0x2f   :  { %v83_v44 = vmul.f32 %v79_v14, %v78_v39  ;;  %v86_v47 = vadd.f32 %v82_v42, %v63_v38 }
  0x30   :  { %v89_v45 = vadd.f32 %v88_v37, %v84_v40  ;;  %v90_v46 = vadd.f32 %v88_v37, %v85_v41 }
  0x31   :  { %v87_v48 = vadd.f32 %v83_v44, %v64_v43  ;;  %v91_v51 = vadd.f32 %v88_v37, %v86_v47 }
  0x32   :  { %v93_v49 = vmax.f32 %v89_v45, 0.0  ;;  %v94_v50 = vmax.f32 %v90_v46, 0.0 }
  0x33   :  { %v92_v52 = vadd.f32 %v88_v37, %v87_v48  ;;  %v95_v53 = vmax.f32 %v91_v51, 0.0 }
  0x34   :  { %97 = vst [vmem:[#allocation7] sm:$0xff] %v93_v49  ;;  %98 = vst [vmem:[#allocation7 + $0x8] sm:$0xff] %v94_v50 }
  0x35   :  { %v96_v54 = vmax.f32 %v92_v52, 0.0  ;;  %99 = vst [vmem:[#allocation7 + $0x10] sm:$0xff] %v95_v53 }
  0x37   :  { %100 = vst [vmem:[#allocation7 + $0x18] sm:$0xff] %v96_v54 }
  0x38   :  { %169 = shalt.err (!%p166_p1)
}
  0x39   :  { %s170_s13 = scalar_lea.hbm %s245_s2, 512 }
  0x3a   :  { %p171_p2 = scmp.ne.s32.totalorder %s245_s2, %s170_s13  ;;  %p174_p3 = scmp.lt.u32.totalorder %s170_s13, %s245_s2 }
  0x3c   :  { %p176_p4 = pnand %p174_p3, %p171_p2 }
  0x3e   :  { %179 = shalt.err (!%p176_p4)
}
  0x3f   :  { %110 = dma.vmem_to_hbm [thread:$0]  %s108_s9, 512, %s245_s2, [#allocation4]  }
  0x40   :  { %184 = dma.done.wait [#allocation4], 512  }
  0x41   :  { %185 = vsyncadd [#allocation4], 4294966784 }
  0x42   :  { %114 = vsyncpa [#allocation3], 1 }
  0x43   :  { %115 = vsyncpa [#allocation4], 1 }
  0x44   :  { %116 = vsyncpa [#allocation5], 1 }

</bundles_post_ra>
